<compile_context>
chip_gen: v7x
topology: tpu7x:2x2x1
jax: 0.10.0
libtpu: 0.0.40
codegen_flags: <defaults>
</compile_context>

<pallas_src>
import functools

import jax
import jax.numpy as jnp
from jax import lax
from jax.experimental import pallas as pl
from jax.experimental.pallas import tpu as pltpu


def _round_up(n, m):
    return ((n + m - 1) // m) * m


def _cdiv(a, b):
    return (a + b - 1) // b


# ----------------------------------------------------------------------------
# Kernels
# ----------------------------------------------------------------------------
def resnet_resident_kernel(x_ref, win_ref, bin_ref, wh_ref, bh_ref, wout_ref,
                           bout_ref, o_ref, *, depth):
    """All weights VMEM-resident; grid is over batch tiles only."""
    x = x_ref[...].astype(jnp.bfloat16)

    # Input layer + activation (f32 accumulation, f32 tanh).
    h = jnp.tanh(
        jnp.dot(x, win_ref[...], preferred_element_type=jnp.float32)
        + bin_ref[...])                                       # (TILE_N, Wp) f32

    def body(i, h):
        # TODO(synk): for depth > 8 (loop not unrolled) confirm via
        # pl.lower_as_mlir that wh_ref[i] stays a view and does not materialize
        # a (w_pad, w_pad) VMEM copy per layer; if it does, chunk-unroll or use
        # the streaming path.
        z = jnp.dot(h.astype(jnp.bfloat16), wh_ref[i],
                    preferred_element_type=jnp.float32) + bh_ref[i]
        return h + jnp.tanh(z)

    if depth > 0:
        h = lax.fori_loop(0, depth, body, h, unroll=(depth <= 8))

    # Output layer (out_bias=True). Lane-dense padded output tile.
    o_ref[...] = (jnp.dot(h.astype(jnp.bfloat16), wout_ref[...],
                          preferred_element_type=jnp.float32)
                  + bout_ref[...])


def resnet_stream_kernel(x_ref, win_ref, bin_ref, wh_ref, bh_ref, wout_ref,
                         bout_ref, o_ref, h_ref, *, depth):
    """Wh/bh streamed one layer per grid step (axis 1); h carried in VMEM scratch."""
    l = pl.program_id(1)

    @pl.when(l == 0)
    def _():
        x = x_ref[...].astype(jnp.bfloat16)
        h_ref[...] = jnp.tanh(
            jnp.dot(x, win_ref[...], preferred_element_type=jnp.float32)
            + bin_ref[...])

    h = h_ref[...]
    z = jnp.dot(h.astype(jnp.bfloat16), wh_ref[0],
                preferred_element_type=jnp.float32) + bh_ref[0]
    h = h + jnp.tanh(z)
    h_ref[...] = h

    @pl.when(l == depth - 1)
    def _():
        o_ref[...] = (jnp.dot(h.astype(jnp.bfloat16), wout_ref[...],
                              preferred_element_type=jnp.float32)
                      + bout_ref[...])


# ----------------------------------------------------------------------------
# Wrapper
# ----------------------------------------------------------------------------
def testnet_forward(x, params, *, depth, tile_n=512, force_streaming=False):
    """x: (N, d) f32. params: dict of (in, out)-layout f32 weights/biases."""
    N, d = x.shape
    width = params["win"].shape[1]
    dd = params["wout"].shape[1]

    # Feature-dim padding: lane-align width/output; sublane-pack the tiny input
    # dim (>=16 for a clean bf16 Win operand).
    d_pad = max(_round_up(d, 16), 16)
    w_pad = _round_up(width, 128)
    dd_pad = _round_up(dd, 128)

    # Even batch tiling: divide N as evenly as possible into <= tile_n chunks,
    # then round the chunk to a sublane multiple (avoids up-to-tn-1 wasted rows).
    n_tiles = max(1, _cdiv(N, tile_n))
    tn = _round_up(_cdiv(N, n_tiles), 8)
    n_pad = _round_up(N, tn)

    # VMEM budget from the physical capacity of this chip (v7x: 64 MiB/TC,
    # v5e/v6e: 128 MiB); leave ~15% headroom for compiler temporaries.
    try:
        vmem_phys = pltpu.get_tpu_info().vmem_capacity_bytes
    except Exception:  # conservative fallback (v7x-sized)
        vmem_phys = 64 * 1024 * 1024
    vmem_limit = min(int(vmem_phys * 0.85), 112 * 1024 * 1024)

    depth_w = max(depth, 1)  # keep Wh/bh BlockSpecs non-empty even for depth == 0

    # Single-buffered resident-weight footprint (bf16 matmul operands, f32 biases).
    wh_bytes = depth_w * w_pad * w_pad * 2
    fixed_w_bytes = ((d_pad * w_pad + w_pad * dd_pad) * 2
                     + (w_pad + dd_pad + depth_w * w_pad) * 4)
    resident_weight_bytes = wh_bytes + fixed_w_bytes

    # Large models (notably on v7x's 64 MiB) stream Wh/bh over a depth grid axis.
    use_streaming = depth >= 1 and (
        force_streaming or resident_weight_bytes > int(0.6 * vmem_limit))

    # Shrink the batch tile if the activation working set + weights would overflow.
    def _act_bytes(t):
        # x/out double buffers + f32 h carry + bf16/f32 temporaries (rough).
        return 2 * t * (d_pad + dd_pad) * 4 + 8 * t * w_pad

    weight_budget = (2 * (w_pad * w_pad * 2 + w_pad * 4) + fixed_w_bytes
                     if use_streaming else resident_weight_bytes)
    while tn > 256 and _act_bytes(tn) + weight_budget > int(0.9 * vmem_limit):
        tn = max(256, _round_up(tn // 2, 8))
        n_pad = _round_up(N, tn)

    # Zero-pad parameters (zeros keep padded lanes exactly zero through tanh and
    # the residual path) and cast matmul operands to bf16; biases stay f32.
    x_p = jnp.pad(x, ((0, n_pad - N), (0, d_pad - d)))
    win = jnp.pad(params["win"],
                  ((0, d_pad - d), (0, w_pad - width))).astype(jnp.bfloat16)
    b_in = jnp.pad(params["bin"], ((0, 0), (0, w_pad - width))).astype(jnp.float32)
    wh_raw = params["wh"] if depth > 0 else jnp.zeros((1, width, width), jnp.float32)
    bh_raw = params["bh"] if depth > 0 else jnp.zeros((1, 1, width), jnp.float32)
    wh = jnp.pad(wh_raw,
                 ((0, 0), (0, w_pad - width), (0, w_pad - width))).astype(jnp.bfloat16)
    bh = jnp.pad(bh_raw, ((0, 0), (0, 0), (0, w_pad - width))).astype(jnp.float32)
    wout = jnp.pad(params["wout"],
                   ((0, w_pad - width), (0, dd_pad - dd))).astype(jnp.bfloat16)
    bout = jnp.pad(params["bout"], ((0, 0), (0, dd_pad - dd))).astype(jnp.float32)

    one = pl.Buffered(1)   # resident parameters: no need to double-buffer

    if not use_streaming:
        kernel = functools.partial(resnet_resident_kernel, depth=depth)
        out = pl.pallas_call(
            kernel,
            out_shape=jax.ShapeDtypeStruct((n_pad, dd_pad), jnp.float32),
            grid=(n_pad // tn,),
            in_specs=[
                pl.BlockSpec((tn, d_pad), lambda i: (i, 0)),                 # x
                pl.BlockSpec((d_pad, w_pad), lambda i: (0, 0),
                             pipeline_mode=one),                            # Win
                pl.BlockSpec((1, w_pad), lambda i: (0, 0),
                             pipeline_mode=one),                            # bin
                pl.BlockSpec((depth_w, w_pad, w_pad), lambda i: (0, 0, 0),
                             pipeline_mode=one),                            # Wh stack
                pl.BlockSpec((depth_w, 1, w_pad), lambda i: (0, 0, 0),
                             pipeline_mode=one),                            # bh stack
                pl.BlockSpec((w_pad, dd_pad), lambda i: (0, 0),
                             pipeline_mode=one),                            # Wout
                pl.BlockSpec((1, dd_pad), lambda i: (0, 0),
                             pipeline_mode=one),                            # bout
            ],
            out_specs=pl.BlockSpec((tn, dd_pad), lambda i: (i, 0)),
            compiler_params=pltpu.CompilerParams(
                dimension_semantics=("parallel",),
                vmem_limit_bytes=vmem_limit),
        )(x_p, win, b_in, wh, bh, wout, bout)
    else:
        kernel = functools.partial(resnet_stream_kernel, depth=depth)
        out = pl.pallas_call(
            kernel,
            out_shape=jax.ShapeDtypeStruct((n_pad, dd_pad), jnp.float32),
            grid=(n_pad // tn, depth),
            in_specs=[
                pl.BlockSpec((tn, d_pad), lambda i, l: (i, 0)),              # x
                pl.BlockSpec((d_pad, w_pad), lambda i, l: (0, 0),
                             pipeline_mode=one),                             # Win
                pl.BlockSpec((1, w_pad), lambda i, l: (0, 0),
                             pipeline_mode=one),                             # bin
                pl.BlockSpec((1, w_pad, w_pad), lambda i, l: (l, 0, 0)),     # Wh (streamed)
                pl.BlockSpec((1, 1, w_pad), lambda i, l: (l, 0, 0)),         # bh (streamed)
                pl.BlockSpec((w_pad, dd_pad), lambda i, l: (0, 0),
                             pipeline_mode=one),                             # Wout
                pl.BlockSpec((1, dd_pad), lambda i, l: (0, 0),
                             pipeline_mode=one),                             # bout
            ],
            out_specs=pl.BlockSpec((tn, dd_pad), lambda i, l: (i, 0)),
            scratch_shapes=[pltpu.VMEM((tn, w_pad), jnp.float32)],           # h carry
            compiler_params=pltpu.CompilerParams(
                dimension_semantics=("parallel", "arbitrary"),
                vmem_limit_bytes=vmem_limit),
        )(x_p, win, b_in, wh, bh, wout, bout)

    return out[:N, :dd]


# ----------------------------------------------------------------------------
# Parameters & references
# ----------------------------------------------------------------------------
def init_params(key, d, dd, width, depth):
    """Deterministic synthetic parameters (uniform, roughly PyTorch-scaled),
    stored pre-transposed to (in, out) layout."""
    keys = jax.random.split(key, 6)

    def unif(k, shape, fan_in):
        bound = 1.0 / jnp.sqrt(fan_in)
        return jax.random.uniform(k, shape, jnp.float32, -bound, bound)

    return {
        "win":  unif(keys[0], (d, width), d),
        "bin":  unif(keys[1], (1, width), d),
        "wh":   unif(keys[2], (depth, width, width), width),
        "bh":   unif(keys[3], (depth, 1, width), width),
        "wout": unif(keys[4], (width, dd), width),
        "bout": unif(keys[5], (1, dd), width),
    }


def reference_forward_f32(x, p, *, depth):
    h = jnp.tanh(x @ p["win"] + p["bin"])
    for i in range(depth):
        h = h + jnp.tanh(h @ p["wh"][i] + p["bh"][i])
    return h @ p["wout"] + p["bout"]


def reference_forward_bf16(x, p, *, depth):
    """Mirrors the kernel's bf16-operand / f32-accumulate arithmetic."""
    bf16, f32 = jnp.bfloat16, jnp.float32
    h = jnp.tanh(jnp.dot(x.astype(bf16), p["win"].astype(bf16),
                         preferred_element_type=f32) + p["bin"])
    for i in range(depth):
        z = jnp.dot(h.astype(bf16), p["wh"][i].astype(bf16),
                    preferred_element_type=f32) + p["bh"][i]
        h = h + jnp.tanh(z)
    return jnp.dot(h.astype(bf16), p["wout"].astype(bf16),
                   preferred_element_type=f32) + p["bout"]


if __name__ == "__main__":
    # Small shapes consistent with TestNet(d, dd, width, depth, 'tanh')
    N, d, dd, width, depth = 8, 4, 2, 32, 3

    key = jax.random.PRNGKey(0)
    kx, kp = jax.random.split(key)
    x = jax.random.normal(kx, (N, d), jnp.float32)
    params = init_params(kp, d, dd, width, depth)

    ref_bf16 = reference_forward_bf16(x, params, depth=depth)
    ref_f32 = reference_forward_f32(x, params, depth=depth)

    # Resident-weights path (default for small models).
    out = jax.block_until_ready(testnet_forward(x, params, depth=depth))
    assert out.shape == (N, dd)
    assert jnp.allclose(out, ref_bf16, atol=2e-3, rtol=2e-3)
    assert jnp.allclose(out, ref_f32, atol=5e-2, rtol=5e-2)

    # Depth-streaming path (the large-model / v7x fallback), exercised here too.
    out_s = jax.block_until_ready(
        testnet_forward(x, params, depth=depth, force_streaming=True))
    assert out_s.shape == (N, dd)
    assert jnp.allclose(out_s, ref_bf16, atol=2e-3, rtol=2e-3)
    assert jnp.allclose(out_s, ref_f32, atol=5e-2, rtol=5e-2)

    print("KERNEL_OK")
</pallas_src>

<mosaic_0001>
module attributes {stable_mosaic.version = 11 : i64} {
  func.func @resnet_resident_kernel(%arg0: i32, %arg1: memref<8x16xf32, #tpu.memory_space<vmem>>, %arg2: memref<16x128xbf16, #tpu.memory_space<vmem>>, %arg3: memref<1x128xf32, #tpu.memory_space<vmem>>, %arg4: memref<3x128x128xbf16, #tpu.memory_space<vmem>>, %arg5: memref<3x1x128xf32, #tpu.memory_space<vmem>>, %arg6: memref<128x128xbf16, #tpu.memory_space<vmem>>, %arg7: memref<1x128xf32, #tpu.memory_space<vmem>>, %arg8: memref<8x128xf32, #tpu.memory_space<vmem>>) attributes {dimension_semantics = [#tpu.dimension_semantics<parallel>], iteration_bounds = array<i64: 1>, scalar_prefetch = 0 : i64, scratch_operands = 0 : i64, tpu.core_type = #tpu.core_type<tc>, window_params = [{transform_indices = @transform_0, window_bounds = array<i64: 8, 16>}, {pipeline_mode = #tpu.pipeline_mode<synchronous>, transform_indices = @transform_1, window_bounds = array<i64: 16, 128>}, {pipeline_mode = #tpu.pipeline_mode<synchronous>, transform_indices = @transform_2, window_bounds = array<i64: 1, 128>}, {pipeline_mode = #tpu.pipeline_mode<synchronous>, transform_indices = @transform_3, window_bounds = array<i64: 3, 128, 128>}, {pipeline_mode = #tpu.pipeline_mode<synchronous>, transform_indices = @transform_4, window_bounds = array<i64: 3, 1, 128>}, {pipeline_mode = #tpu.pipeline_mode<synchronous>, transform_indices = @transform_5, window_bounds = array<i64: 128, 128>}, {pipeline_mode = #tpu.pipeline_mode<synchronous>, transform_indices = @transform_6, window_bounds = array<i64: 1, 128>}, {transform_indices = @transform_7, window_bounds = array<i64: 8, 128>}]} {
    %c0 = arith.constant 0 : index
    %c0_0 = arith.constant 0 : index
    %0 = vector.load %arg1[%c0, %c0_0] : memref<8x16xf32, #tpu.memory_space<vmem>>, vector<8x16xf32>
    %1 = arith.truncf %0 : vector<8x16xf32> to vector<8x16xbf16>
    %c0_1 = arith.constant 0 : index
    %c0_2 = arith.constant 0 : index
    %2 = vector.load %arg2[%c0_1, %c0_2] : memref<16x128xbf16, #tpu.memory_space<vmem>>, vector<16x128xbf16>
    %cst = arith.constant dense<0.000000e+00> : vector<8x128xf32>
    %3 = tpu.matmul %1, %2, %cst {dimension_numbers = #tpu.dot_dimension_numbers<[1], [0], [0], [1], [0, 0, 1, 1], [], []>} : vector<8x16xbf16>, vector<16x128xbf16>, vector<8x128xf32> -> vector<8x128xf32>
    %c0_3 = arith.constant 0 : index
    %c0_4 = arith.constant 0 : index
    %4 = vector.load %arg3[%c0_3, %c0_4] : memref<1x128xf32, #tpu.memory_space<vmem>>, vector<1x128xf32>
    %5 = vector.broadcast %4 : vector<1x128xf32> to vector<8x128xf32>
    %6 = arith.addf %3, %5 : vector<8x128xf32>
    %7 = math.tanh %6 : vector<8x128xf32>
    %c0_i32 = arith.constant 0 : i32
    %8 = arith.truncf %7 : vector<8x128xf32> to vector<8x128xbf16>
    %9 = arith.index_cast %c0_i32 : i32 to index
    %c0_5 = arith.constant 0 : index
    %c0_6 = arith.constant 0 : index
    %10 = vector.load %arg4[%9, %c0_5, %c0_6] : memref<3x128x128xbf16, #tpu.memory_space<vmem>>, vector<1x128x128xbf16>
    %11 = vector.shape_cast %10 : vector<1x128x128xbf16> to vector<128x128xbf16>
    %cst_7 = arith.constant dense<0.000000e+00> : vector<8x128xf32>
    %12 = tpu.matmul %8, %11, %cst_7 {dimension_numbers = #tpu.dot_dimension_numbers<[1], [0], [0], [1], [0, 0, 1, 1], [], []>} : vector<8x128xbf16>, vector<128x128xbf16>, vector<8x128xf32> -> vector<8x128xf32>
    %13 = arith.index_cast %c0_i32 : i32 to index
    %c0_8 = arith.constant 0 : index
    %c0_9 = arith.constant 0 : index
    %14 = vector.load %arg5[%13, %c0_8, %c0_9] : memref<3x1x128xf32, #tpu.memory_space<vmem>>, vector<1x1x128xf32>
    %15 = vector.shape_cast %14 : vector<1x1x128xf32> to vector<1x128xf32>
    %16 = vector.broadcast %15 : vector<1x128xf32> to vector<8x128xf32>
    %17 = arith.addf %12, %16 : vector<8x128xf32>
    %18 = math.tanh %17 : vector<8x128xf32>
    %19 = arith.addf %7, %18 : vector<8x128xf32>
    %c1_i32 = arith.constant 1 : i32
    %20 = arith.truncf %19 : vector<8x128xf32> to vector<8x128xbf16>
    %21 = arith.index_cast %c1_i32 : i32 to index
    %c0_10 = arith.constant 0 : index
    %c0_11 = arith.constant 0 : index
    %22 = vector.load %arg4[%21, %c0_10, %c0_11] : memref<3x128x128xbf16, #tpu.memory_space<vmem>>, vector<1x128x128xbf16>
    %23 = vector.shape_cast %22 : vector<1x128x128xbf16> to vector<128x128xbf16>
    %cst_12 = arith.constant dense<0.000000e+00> : vector<8x128xf32>
    %24 = tpu.matmul %20, %23, %cst_12 {dimension_numbers = #tpu.dot_dimension_numbers<[1], [0], [0], [1], [0, 0, 1, 1], [], []>} : vector<8x128xbf16>, vector<128x128xbf16>, vector<8x128xf32> -> vector<8x128xf32>
    %25 = arith.index_cast %c1_i32 : i32 to index
    %c0_13 = arith.constant 0 : index
    %c0_14 = arith.constant 0 : index
    %26 = vector.load %arg5[%25, %c0_13, %c0_14] : memref<3x1x128xf32, #tpu.memory_space<vmem>>, vector<1x1x128xf32>
    %27 = vector.shape_cast %26 : vector<1x1x128xf32> to vector<1x128xf32>
    %28 = vector.broadcast %27 : vector<1x128xf32> to vector<8x128xf32>
    %29 = arith.addf %24, %28 : vector<8x128xf32>
    %30 = math.tanh %29 : vector<8x128xf32>
    %31 = arith.addf %19, %30 : vector<8x128xf32>
    %c2_i32 = arith.constant 2 : i32
    %32 = arith.truncf %31 : vector<8x128xf32> to vector<8x128xbf16>
    %33 = arith.index_cast %c2_i32 : i32 to index
    %c0_15 = arith.constant 0 : index
    %c0_16 = arith.constant 0 : index
    %34 = vector.load %arg4[%33, %c0_15, %c0_16] : memref<3x128x128xbf16, #tpu.memory_space<vmem>>, vector<1x128x128xbf16>
    %35 = vector.shape_cast %34 : vector<1x128x128xbf16> to vector<128x128xbf16>
    %cst_17 = arith.constant dense<0.000000e+00> : vector<8x128xf32>
    %36 = tpu.matmul %32, %35, %cst_17 {dimension_numbers = #tpu.dot_dimension_numbers<[1], [0], [0], [1], [0, 0, 1, 1], [], []>} : vector<8x128xbf16>, vector<128x128xbf16>, vector<8x128xf32> -> vector<8x128xf32>
    %37 = arith.index_cast %c2_i32 : i32 to index
    %c0_18 = arith.constant 0 : index
    %c0_19 = arith.constant 0 : index
    %38 = vector.load %arg5[%37, %c0_18, %c0_19] : memref<3x1x128xf32, #tpu.memory_space<vmem>>, vector<1x1x128xf32>
    %39 = vector.shape_cast %38 : vector<1x1x128xf32> to vector<1x128xf32>
    %40 = vector.broadcast %39 : vector<1x128xf32> to vector<8x128xf32>
    %41 = arith.addf %36, %40 : vector<8x128xf32>
    %42 = math.tanh %41 : vector<8x128xf32>
    %43 = arith.addf %31, %42 : vector<8x128xf32>
    %c3_i32 = arith.constant 3 : i32
    %44 = arith.truncf %43 : vector<8x128xf32> to vector<8x128xbf16>
    %c0_20 = arith.constant 0 : index
    %c0_21 = arith.constant 0 : index
    %45 = vector.load %arg6[%c0_20, %c0_21] : memref<128x128xbf16, #tpu.memory_space<vmem>>, vector<128x128xbf16>
    %cst_22 = arith.constant dense<0.000000e+00> : vector<8x128xf32>
    %46 = tpu.matmul %44, %45, %cst_22 {dimension_numbers = #tpu.dot_dimension_numbers<[1], [0], [0], [1], [0, 0, 1, 1], [], []>} : vector<8x128xbf16>, vector<128x128xbf16>, vector<8x128xf32> -> vector<8x128xf32>
    %c0_23 = arith.constant 0 : index
    %c0_24 = arith.constant 0 : index
    %47 = vector.load %arg7[%c0_23, %c0_24] : memref<1x128xf32, #tpu.memory_space<vmem>>, vector<1x128xf32>
    %48 = vector.broadcast %47 : vector<1x128xf32> to vector<8x128xf32>
    %49 = arith.addf %46, %48 : vector<8x128xf32>
    %c0_25 = arith.constant 0 : index
    %c0_26 = arith.constant 0 : index
    %50 = vector.load %arg8[%c0_25, %c0_26] : memref<8x128xf32, #tpu.memory_space<vmem>>, vector<8x128xf32>
    tpu.vector_store %arg8[%c0_25, %c0_26], %49 {strides = array<i32>} : memref<8x128xf32, #tpu.memory_space<vmem>>, vector<8x128xf32>,
    return
  }
  func.func @transform_0(%arg0: i32) -> (i32, i32) {
    %c0_i32 = arith.constant 0 : i32
    %c0_i32_0 = arith.constant 0 : i32
    return %arg0, %c0_i32 : i32, i32
  }
  func.func @transform_1(%arg0: i32) -> (i32, i32) {
    %c0_i32 = arith.constant 0 : i32
    %c0_i32_0 = arith.constant 0 : i32
    %c0_i32_1 = arith.constant 0 : i32
    return %c0_i32, %c0_i32_0 : i32, i32
  }
  func.func @transform_2(%arg0: i32) -> (i32, i32) {
    %c0_i32 = arith.constant 0 : i32
    %c0_i32_0 = arith.constant 0 : i32
    %c0_i32_1 = arith.constant 0 : i32
    return %c0_i32, %c0_i32_0 : i32, i32
  }
  func.func @transform_3(%arg0: i32) -> (i32, i32, i32) {
    %c0_i32 = arith.constant 0 : i32
    %c0_i32_0 = arith.constant 0 : i32
    %c0_i32_1 = arith.constant 0 : i32
    %c0_i32_2 = arith.constant 0 : i32
    return %c0_i32, %c0_i32_0, %c0_i32_1 : i32, i32, i32
  }
  func.func @transform_4(%arg0: i32) -> (i32, i32, i32) {
    %c0_i32 = arith.constant 0 : i32
    %c0_i32_0 = arith.constant 0 : i32
    %c0_i32_1 = arith.constant 0 : i32
    %c0_i32_2 = arith.constant 0 : i32
    return %c0_i32, %c0_i32_0, %c0_i32_1 : i32, i32, i32
  }
  func.func @transform_5(%arg0: i32) -> (i32, i32) {
    %c0_i32 = arith.constant 0 : i32
    %c0_i32_0 = arith.constant 0 : i32
    %c0_i32_1 = arith.constant 0 : i32
    return %c0_i32, %c0_i32_0 : i32, i32
  }
  func.func @transform_6(%arg0: i32) -> (i32, i32) {
    %c0_i32 = arith.constant 0 : i32
    %c0_i32_0 = arith.constant 0 : i32
    %c0_i32_1 = arith.constant 0 : i32
    return %c0_i32, %c0_i32_0 : i32, i32
  }
  func.func @transform_7(%arg0: i32) -> (i32, i32) {
    %c0_i32 = arith.constant 0 : i32
    %c0_i32_0 = arith.constant 0 : i32
    return %arg0, %c0_i32 : i32, i32
  }
}

</mosaic_0001>

<bundles_post_ra>
// kernel: tpu_custom_call.1
= control target key start
LH: loop header
LB: loop body
LE: loop exit
PB: predicated region body
PF: predicated region fallthrough
CT: control target
= control target key end

     0   :  { %12 = vsyncpa [#allocation3], 0  ;;  %s1128_s0 = inlined_call_operand.hbm [shape: f32[8,16], index: 0, kind: input, shape index: {}]   ;;  %s1129_s1 = inlined_call_operand.hbm [shape: bf16[16,128], index: 1, kind: input, shape index: {}]   ;;  %s1130_s2 = inlined_call_operand.vmem [shape: f32[1,128], index: 2, kind: input, shape index: {}]   ;;  %s1131_s3 = inlined_call_operand.hbm [shape: bf16[3,128,128], index: 3, kind: input, shape index: {}]   ;;  %s1132_s4 = inlined_call_operand.vmem [shape: f32[3,1,128], index: 4, kind: input, shape index: {}]   ;;  %s1133_s5 = inlined_call_operand.hbm [shape: bf16[128,128], index: 5, kind: input, shape index: {}]   ;;  %s1134_s6 = inlined_call_operand.vmem [shape: f32[1,128], index: 6, kind: input, shape index: {}]   ;;  %s1135_s7 = inlined_call_operand.hbm [shape: f32[8,128], index: 7, kind: output, shape index: {}]  }
   0x1   :  { %13 = vsyncpa [#allocation6], 0 }
   0x2   :  { %14 = vsyncpa [#allocation9], 0 }
   0x3   :  { %15 = vsyncpa [#allocation4], 0  ;;  %s952_s24 = smov [#allocation5]   ;;  %s834_s28 = scalar_lea.hbm %s1129_s1, 128 }
   0x4   :  { %s31_s25 = sshll.u32 %s952_s24, 4  ;;  %p835_p0 = scmp.ne.s32.totalorder %s1129_s1, %s834_s28  ;;  %s32_s25 = int_to_ptr.vmem [resolvable:$true] %s31_s25 }
   0x5   :  { %p838_p1 = scmp.lt.u32.totalorder %s834_s28, %s1129_s1 }
   0x7   :  { %p840_p2 = pnand %p838_p1, %p835_p0 }
   0x9   :  { %843 = shalt.err (!%p840_p2)
}
   0xa   :  { %s844_s10 = scalar_lea.vmem %s32_s25, 128  ;;  %p849_p4 = scmp.lt.s32.totalorder %s32_s25, %s32_s25 }
   0xb   :  { %p845_p3 = scmp.ne.s32.totalorder %s32_s25, %s844_s10  ;;  %p850_p5 = scmp.lt.s32.totalorder %s844_s10, %s844_s10 }
   0xd   :  { %p851_p6 = por %p850_p5, %p849_p4 }
   0xf   :  { %p852_p7 = pnand %p851_p6, %p845_p3 }
  0x11   :  { %855 = shalt.err (!%p852_p7)
}
  0x12   :  { %s953_s11 = smov 64   ;;  %s954_s12 = smov 4  }
  0x13   :  { %37 = dma.hbm_to_vmem [thread:$0]  %s1129_s1, 128, %s32_s25, [#allocation6], %s953_s11, %s953_s11, %s954_s12  }
  0x14   :  { %s955_s15 = smov [#allocation2]   ;;  %s956_s17 = smov [#allocation7]  }
  0x15   :  { %s22_s16 = sshll.u32 %s955_s15, 4  ;;  %s45_s18 = sshll.u32 %s956_s17, 4  ;;  %s23_s16 = int_to_ptr.vmem [resolvable:$true] %s22_s16  ;;  %s46_s18 = int_to_ptr.vmem [resolvable:$true] %s45_s18 }
  0x16   :  { %s856_s21 = scalar_lea.hbm %s1128_s0, 128 }
  0x17   :  { %p857_p8 = scmp.ne.s32.totalorder %s1128_s0, %s856_s21  ;;  %p860_p9 = scmp.lt.u32.totalorder %s856_s21, %s1128_s0 }
  0x19   :  { %p862_p10 = pnand %p860_p9, %p857_p8 }
  0x1b   :  { %865 = shalt.err (!%p862_p10)
}
  0x1c   :  { %s866_s1 = scalar_lea.vmem %s23_s16, 128  ;;  %p871_p12 = scmp.lt.s32.totalorder %s23_s16, %s23_s16 }
  0x1d   :  { %p867_p11 = scmp.ne.s32.totalorder %s23_s16, %s866_s1  ;;  %p872_p13 = scmp.lt.s32.totalorder %s866_s1, %s866_s1 }
  0x1f   :  { %p873_p0 = por %p872_p13, %p871_p12 }
  0x21   :  { %p874_p1 = pnand %p873_p0, %p867_p11 }
  0x23   :  { %877 = shalt.err (!%p874_p1)
}
  0x24   :  { %25 = dma.hbm_to_vmem [thread:$0]  %s1128_s0, 128, %s23_s16, [#allocation3]  }
  0x25   :  { %s878_s30 = scalar_lea.hbm %s1131_s3, 3072 }
  0x26   :  { %p879_p2 = scmp.ne.s32.totalorder %s1131_s3, %s878_s30  ;;  %p882_p3 = scmp.lt.u32.totalorder %s878_s30, %s1131_s3 }
  0x28   :  { %p884_p4 = pnand %p882_p3, %p879_p2 }
  0x2a   :  { %887 = shalt.err (!%p884_p4)
}
  0x2b   :  { %s888_s14 = scalar_lea.vmem %s46_s18, 3072  ;;  %p893_p6 = scmp.lt.s32.totalorder %s46_s18, %s46_s18 }
  0x2c   :  { %p889_p5 = scmp.ne.s32.totalorder %s46_s18, %s888_s14  ;;  %p894_p7 = scmp.lt.s32.totalorder %s888_s14, %s888_s14 }
  0x2e   :  { %p895_p8 = por %p894_p7, %p893_p6 }
  0x30   :  { %p896_p9 = pnand %p895_p8, %p889_p5 }
  0x32   :  { %899 = shalt.err (!%p896_p9)
}
  0x33   :  { %51 = dma.hbm_to_vmem [thread:$0]  %s1131_s3, 3072, %s46_s18, [#allocation6], %s953_s11, %s953_s11, %s954_s12  }
  0x34   :  { %s957_s16 = smov [#allocation8]   ;;  %s900_s21 = scalar_lea.hbm %s1133_s5, 1024 }
  0x35   :  { %s59_s17 = sshll.u32 %s957_s16, 4  ;;  %p901_p10 = scmp.ne.s32.totalorder %s1133_s5, %s900_s21  ;;  %s60_s17 = int_to_ptr.vmem [resolvable:$true] %s59_s17 }
  0x36   :  { %p904_p11 = scmp.lt.u32.totalorder %s900_s21, %s1133_s5 }
  0x38   :  { %p906_p12 = pnand %p904_p11, %p901_p10 }
  0x3a   :  { %909 = shalt.err (!%p906_p12)
}
  0x3b   :  { %s910_s1 = scalar_lea.vmem %s60_s17, 1024  ;;  %p915_p0 = scmp.lt.s32.totalorder %s60_s17, %s60_s17 }
  0x3c   :  { %p911_p13 = scmp.ne.s32.totalorder %s60_s17, %s910_s1  ;;  %p916_p1 = scmp.lt.s32.totalorder %s910_s1, %s910_s1 }
  0x3e   :  { %p917_p2 = por %p916_p1, %p915_p0 }
  0x40   :  { %p918_p3 = pnand %p917_p2, %p911_p13 }
  0x42   :  { %921 = shalt.err (!%p918_p3)
}
  0x43   :  { %65 = dma.hbm_to_vmem [thread:$0]  %s1133_s5, 1024, %s60_s17, [#allocation9], %s953_s11, %s953_s11, %s954_s12  }
  0x44   :  { %944 = dma.done.wait [#allocation3], 128  }
  0x45   :  { %945 = vsyncadd [#allocation3], 4294967168 }
  0x46   :  { %946 = dma.done.wait [#allocation6], 3200  }
  0x47   :  { %947 = vsyncadd [#allocation6], 4294964096 }
  0x48   :  { %948 = dma.done.wait [#allocation9], 1024  }
  0x49   :  { %949 = vsyncadd [#allocation9], 4294966272  ;;  %v958_v0 = vmov 0.0   ;;  %vm959_vm0 = vmmov 0   ;;  %v793_v1 = vld [vmem:[#allocation5] sm:$0xff]   ;;  %v81_v2 = vld [vmem:[#allocation2] sm:$0xff] }
  0x4a   :  { %698 = vmatprep.subr.bf16.mxu0 %v958_v0  ;;  %700 = vmatprep.mubr.msk.bf16.mxu0 %vm959_vm0, %v958_v0  ;;  %v82_v3 = vpack.c.bf16 %v81_v2, %v81_v2  ;;  %vm98_vm1 = vcmask 130048   ;;  %v794_v4 = vld [vmem:[#allocation7] sm:$0xff]   ;;  %v795_v5 = vld [vmem:[#allocation7 + $0x8] sm:$0xff]   ;;  %v796_v6 = vld [vmem:[#allocation7 + $0x10] sm:$0xff]   ;;  %s960_s9 = smov [#allocation10]  }
  0x4b   :  { %704 = vmatprep.subr.bf16.mxu1 %v958_v0  ;;  %720 = vmatprep.mubr.msk.bf16.mxu1 %vm959_vm0, %v958_v0  ;;  %v797_v7 = vld [vmem:[#allocation7 + $0x18] sm:$0xff]   ;;  %v798_v8 = vld [vmem:[#allocation7 + $0x20] sm:$0xff]   ;;  %v799_v9 = vld [vmem:[#allocation7 + $0x28] sm:$0xff]   ;;  %s608_s10 = sshll.u32 %s960_s9, 4  ;;  %s609_s10 = int_to_ptr.vmem [resolvable:$true] %s608_s10 }
  0x4c   :  { %699 = vmatpush3.bf16.msra.mxu0 %v793_v1  ;;  %705 = vmatpush3.bf16.msra.mxu1 %v794_v4  ;;  %v800_v10 = vld [vmem:[#allocation7 + $0x30] sm:$0xff]   ;;  %v801_v11 = vld [vmem:[#allocation7 + $0x38] sm:$0xff]   ;;  %v802_v12 = vld [vmem:[#allocation7 + $0x40] sm:$0xff]   ;;  %p927_p5 = scmp.lt.s32.totalorder %s609_s10, %s609_s10 }
  0x4d   :  { %724 = vmatprep.subr.bf16.mxu0 %v958_v0  ;;  %706 = vmatprep.subr.bf16.mxu1 %v958_v0  ;;  %v803_v13 = vld [vmem:[#allocation7 + $0x48] sm:$0xff]   ;;  %v804_v14 = vld [vmem:[#allocation7 + $0x50] sm:$0xff]   ;;  %v805_v15 = vld [vmem:[#allocation7 + $0x58] sm:$0xff]  }
  0x4e   :  { %v619_v16 = vld [vmem:[%s1130_s2] ss:$0 sm:$0xff]  ;;  %v806_v24 = vld [vmem:[#allocation7 + $0x60] sm:$0xff]   ;;  %v807_v25 = vld [vmem:[#allocation7 + $0x68] sm:$0xff]  }
  0x4f   :  { %701 = vmatmul.mubr.msk.bf16.vlgmr.msra.gmra.mrb[0].mxu0 %vm98_vm1, %v82_v3  ;;  %v808_v26 = vld [vmem:[#allocation7 + $0x70] sm:$0xff]   ;;  %v809_v27 = vld [vmem:[#allocation7 + $0x78] sm:$0xff]   ;;  %v810_v28 = vld [vmem:[#allocation7 + $0x80] sm:$0xff]  }
  0x50   :  { %740 = vmatprep.mubr.msk.bf16.mxu0 %vm959_vm0, %v958_v0  ;;  %707 = vmatpush3.bf16.msra.mxu1 %v795_v5  ;;  %v811_v29 = vld [vmem:[#allocation7 + $0x88] sm:$0xff]   ;;  %v812_v30 = vld [vmem:[#allocation7 + $0x90] sm:$0xff]   ;;  %v813_v31 = vld [vmem:[#allocation7 + $0x98] sm:$0xff]  }
  0x51   :  { %708 = vmatprep.subr.bf16.mxu1 %v958_v0  ;;  %725 = vmatpush3.bf16.msra.mxu0 %v802_v12  ;;  %v622_v32 = vld [vmem:[%s1132_s4] ss:$0 sm:$0xff]  ;;  %v814_v41 = vld [vmem:[#allocation7 + $0xa0] sm:$0xff]   ;;  %v815_v42 = vld [vmem:[#allocation7 + $0xa8] sm:$0xff]  }
  0x52   :  { %726 = vmatprep.subr.bf16.mxu0 %v958_v0  ;;  %v816_v43 = vld [vmem:[#allocation7 + $0xb0] sm:$0xff]   ;;  %v817_v44 = vld [vmem:[#allocation7 + $0xb8] sm:$0xff]   ;;  %v818_v45 = vld [vmem:[#allocation8] sm:$0xff]  }
  0x53   :  { %v819_v46 = vld [vmem:[#allocation8 + $0x8] sm:$0xff]   ;;  %v820_v47 = vld [vmem:[#allocation8 + $0x10] sm:$0xff]   ;;  %v821_v48 = vld [vmem:[#allocation8 + $0x18] sm:$0xff]  }
  0x54   :  { %709 = vmatpush3.bf16.msra.mxu1 %v796_v6  ;;  %v632_v49 = vld [vmem:[%s1132_s4 + $0x1] ss:$0 sm:$0xff]  ;;  %v822_v58 = vld [vmem:[#allocation8 + $0x20] sm:$0xff]   ;;  %v823_v59 = vld [vmem:[#allocation8 + $0x28] sm:$0xff]  }
  0x55   :  { %710 = vmatprep.subr.bf16.mxu1 %v958_v0  ;;  %727 = vmatpush3.bf16.msra.mxu0 %v803_v13  ;;  %v824_v60 = vld [vmem:[#allocation8 + $0x30] sm:$0xff]   ;;  %v825_v61 = vld [vmem:[#allocation8 + $0x38] sm:$0xff]  }
  0x56   :  { %728 = vmatprep.subr.bf16.mxu0 %v958_v0  ;;  %v642_v62 = vld [vmem:[%s1132_s4 + $0x2] ss:$0 sm:$0xff]  ;;  %s922_s4 = scalar_lea.vmem %s609_s10, 128 }
  0x57   :  { %p923_p4 = scmp.ne.s32.totalorder %s609_s10, %s922_s4  ;;  %p928_p6 = scmp.lt.s32.totalorder %s922_s4, %s922_s4 }
  0x58   :  { %711 = vmatpush3.bf16.msra.mxu1 %v797_v7 }
  0x59   :  { %712 = vmatprep.subr.bf16.mxu1 %v958_v0  ;;  %729 = vmatpush3.bf16.msra.mxu0 %v804_v14  ;;  %p929_p7 = por %p928_p6, %p927_p5 }
  0x5a   :  { %730 = vmatprep.subr.bf16.mxu0 %v958_v0 }
  0x5b   :  { %p930_p8 = pnand %p929_p7, %p923_p4 }
  0x5c   :  { %713 = vmatpush3.bf16.msra.mxu1 %v798_v8  ;;  %v651_v8 = vld [vmem:[%s1134_s6] ss:$0 sm:$0xff] }
  0x5d   :  { %714 = vmatprep.subr.bf16.mxu1 %v958_v0  ;;  %731 = vmatpush3.bf16.msra.mxu0 %v805_v15 }
  0x5e   :  { %732 = vmatprep.subr.bf16.mxu0 %v958_v0 }
  0x60   :  { %715 = vmatpush3.bf16.msra.mxu1 %v799_v9 }
  0x61   :  { %716 = vmatprep.subr.bf16.mxu1 %v958_v0  ;;  %733 = vmatpush3.bf16.msra.mxu0 %v806_v24 }
  0x62   :  { %734 = vmatprep.subr.bf16.mxu0 %v958_v0 }
  0x64   :  { %717 = vmatpush3.bf16.msra.mxu1 %v800_v10 }
  0x65   :  { %718 = vmatprep.subr.bf16.mxu1 %v958_v0  ;;  %735 = vmatpush3.bf16.msra.mxu0 %v807_v25 }
  0x66   :  { %736 = vmatprep.subr.bf16.mxu0 %v958_v0 }
  0x68   :  { %719 = vmatpush3.bf16.msra.mxu1 %v801_v11 }
  0x69   :  { %744 = vmatprep.subr.bf16.mxu1 %v958_v0  ;;  %737 = vmatpush3.bf16.msra.mxu0 %v808_v26 }
  0x6a   :  { %738 = vmatprep.subr.bf16.mxu0 %v958_v0 }
  0x6d   :  { %739 = vmatpush3.bf16.msra.mxu0 %v809_v27 }
  0x6e   :  { %764 = vmatprep.subr.bf16.mxu0 %v958_v0 }
 0x122   :  { %v136_v17 = vpop.f32.mrb[0].mxu0 }
 0x123   :  { %v137_v18 = vadd.f32 %v619_v16, %v136_v17  ;;  %v702_v19 = vpop.f32.mrb[1].mxu0 }
 0x124   :  { %v139_v20 = vpop.f32.mrb[2].mxu0 }
 0x125   :  { %826 = vtanh.f32 %v137_v18  ;;  %v703_v21 = vpop.f32.mrb[3].mxu0 }
 0x12f   :  { %v827_v22 = vpop.eup %826 }
 0x130   :  { %v143_v23 = vpack.c.bf16 %v827_v22, %v827_v22 }
 0x132   :  { %721 = vmatmul.mubr.bf16.vlgmr.msra.gmra.mrb[0].mxu1 %v143_v23 }
 0x133   :  { %760 = vmatprep.mubr.msk.bf16.mxu1 %vm959_vm0, %v958_v0  ;;  %745 = vmatpush3.bf16.msra.mxu1 %v810_v28 }
 0x134   :  { %746 = vmatprep.subr.bf16.mxu1 %v958_v0 }
 0x137   :  { %747 = vmatpush3.bf16.msra.mxu1 %v811_v29 }
 0x138   :  { %748 = vmatprep.subr.bf16.mxu1 %v958_v0 }
 0x13b   :  { %749 = vmatpush3.bf16.msra.mxu1 %v812_v30 }
 0x13c   :  { %750 = vmatprep.subr.bf16.mxu1 %v958_v0 }
 0x13f   :  { %751 = vmatpush3.bf16.msra.mxu1 %v813_v31 }
 0x140   :  { %752 = vmatprep.subr.bf16.mxu1 %v958_v0 }
 0x143   :  { %753 = vmatpush3.bf16.msra.mxu1 %v814_v41 }
 0x144   :  { %754 = vmatprep.subr.bf16.mxu1 %v958_v0 }
 0x147   :  { %755 = vmatpush3.bf16.msra.mxu1 %v815_v42 }
 0x148   :  { %756 = vmatprep.subr.bf16.mxu1 %v958_v0 }
 0x14b   :  { %757 = vmatpush3.bf16.msra.mxu1 %v816_v43 }
 0x14c   :  { %758 = vmatprep.subr.bf16.mxu1 %v958_v0 }
 0x14f   :  { %759 = vmatpush3.bf16.msra.mxu1 %v817_v44 }
 0x205   :  { %v249_v33 = vpop.f32.mrb[0].mxu1 }
 0x206   :  { %v250_v34 = vadd.f32 %v622_v32, %v249_v33  ;;  %v722_v35 = vpop.f32.mrb[1].mxu1 }
 0x207   :  { %v252_v36 = vpop.f32.mrb[2].mxu1 }
 0x208   :  { %828 = vtanh.f32 %v250_v34  ;;  %v723_v37 = vpop.f32.mrb[3].mxu1 }
 0x212   :  { %v829_v38 = vpop.eup %828 }
 0x213   :  { %v256_v39 = vadd.f32 %v829_v38, %v827_v22 }
 0x215   :  { %v257_v40 = vpack.c.bf16 %v256_v39, %v256_v39 }
 0x217   :  { %741 = vmatmul.mubr.bf16.vlgmr.msra.gmra.mrb[4].mxu0 %v257_v40 }
 0x218   :  { %780 = vmatprep.mubr.msk.bf16.mxu0 %vm959_vm0, %v958_v0  ;;  %765 = vmatpush3.bf16.msra.mxu0 %v818_v45 }
 0x219   :  { %766 = vmatprep.subr.bf16.mxu0 %v958_v0 }
 0x21c   :  { %767 = vmatpush3.bf16.msra.mxu0 %v819_v46 }
 0x21d   :  { %768 = vmatprep.subr.bf16.mxu0 %v958_v0 }
 0x220   :  { %769 = vmatpush3.bf16.msra.mxu0 %v820_v47 }
 0x221   :  { %770 = vmatprep.subr.bf16.mxu0 %v958_v0 }
 0x224   :  { %771 = vmatpush3.bf16.msra.mxu0 %v821_v48 }
 0x225   :  { %772 = vmatprep.subr.bf16.mxu0 %v958_v0 }
 0x228   :  { %773 = vmatpush3.bf16.msra.mxu0 %v822_v58 }
 0x229   :  { %774 = vmatprep.subr.bf16.mxu0 %v958_v0 }
 0x22c   :  { %775 = vmatpush3.bf16.msra.mxu0 %v823_v59 }
 0x22d   :  { %776 = vmatprep.subr.bf16.mxu0 %v958_v0 }
 0x230   :  { %777 = vmatpush3.bf16.msra.mxu0 %v824_v60 }
 0x231   :  { %778 = vmatprep.subr.bf16.mxu0 %v958_v0 }
 0x234   :  { %779 = vmatpush3.bf16.msra.mxu0 %v825_v61 }
 0x2ea   :  { %v365_v50 = vpop.f32.mrb[4].mxu0 }
 0x2eb   :  { %v366_v51 = vadd.f32 %v632_v49, %v365_v50  ;;  %v742_v52 = vpop.f32.mrb[5].mxu0 }
 0x2ec   :  { %v368_v53 = vpop.f32.mrb[6].mxu0 }
 0x2ed   :  { %830 = vtanh.f32 %v366_v51  ;;  %v743_v54 = vpop.f32.mrb[7].mxu0 }
 0x2f7   :  { %v831_v55 = vpop.eup %830 }
 0x2f8   :  { %v372_v56 = vadd.f32 %v831_v55, %v256_v39 }
 0x2fa   :  { %v373_v57 = vpack.c.bf16 %v372_v56, %v372_v56 }
 0x2fc   :  { %761 = vmatmul.mubr.bf16.vlgmr.msra.gmra.mrb[4].mxu1 %v373_v57 }
 0x3cf   :  { %v481_v63 = vpop.f32.mrb[4].mxu1 }
 0x3d0   :  { %v482_v1 = vadd.f32 %v642_v62, %v481_v63  ;;  %v762_v2 = vpop.f32.mrb[5].mxu1 }
 0x3d1   :  { %v484_v3 = vpop.f32.mrb[6].mxu1 }
 0x3d2   :  { %832 = vtanh.f32 %v482_v1  ;;  %v763_v4 = vpop.f32.mrb[7].mxu1 }
 0x3dc   :  { %v833_v5 = vpop.eup %832 }
 0x3dd   :  { %v488_v6 = vadd.f32 %v833_v5, %v372_v56 }
 0x3df   :  { %v489_v7 = vpack.c.bf16 %v488_v6, %v488_v6 }
 0x3e1   :  { %781 = vmatmul.mubr.bf16.vlgmr.msra.gmra.mrb[8].mxu0 %v489_v7 }
 0x4b4   :  { %v595_v0 = vpop.f32.mrb[8].mxu0 }
 0x4b5   :  { %v596_v9 = vadd.f32 %v651_v8, %v595_v0  ;;  %v782_v10 = vpop.f32.mrb[9].mxu0 }
 0x4b6   :  { %v598_v11 = vpop.f32.mrb[10].mxu0 }
 0x4b7   :  { %601 = vst [vmem:[#allocation10] sm:$0xff] %v596_v9  ;;  %v783_v12 = vpop.f32.mrb[11].mxu0 }
 0x4b8   :  { %933 = shalt.err (!%p930_p8)
}
 0x4b9   :  { %s934_s6 = scalar_lea.hbm %s1135_s7, 128 }
 0x4ba   :  { %p935_p9 = scmp.ne.s32.totalorder %s1135_s7, %s934_s6  ;;  %p938_p10 = scmp.lt.u32.totalorder %s934_s6, %s1135_s7 }
 0x4bc   :  { %p940_p11 = pnand %p938_p10, %p935_p9 }
 0x4be   :  { %943 = shalt.err (!%p940_p11)
}
 0x4bf   :  { %611 = dma.vmem_to_hbm [thread:$0]  %s609_s10, 128, %s1135_s7, [#allocation4]  }
 0x4c0   :  { %950 = dma.done.wait [#allocation4], 128  }
 0x4c1   :  { %951 = vsyncadd [#allocation4], 4294967168 }
 0x4c2   :  { %615 = vsyncpa [#allocation3], 1 }
 0x4c3   :  { %616 = vsyncpa [#allocation6], 1 }
 0x4c4   :  { %617 = vsyncpa [#allocation9], 1 }
 0x4c5   :  { %618 = vsyncpa [#allocation4], 1 }

</bundles_post_ra>
